<compile_context>
chip_gen: v7x
topology: tpu7x:2x2x1
jax: 0.10.0
libtpu: 0.0.40
codegen_flags: <defaults>
</compile_context>

<pallas_src>
import functools
import math

import jax
import jax.numpy as jnp
from jax import lax
from jax.experimental import pallas as pl
from jax.experimental.pallas import tpu as pltpu


def _round_up(n, m):
    return ((n + m - 1) // m) * m


def _pad_to(x, shape):
    pads = [(0, t - s) for s, t in zip(x.shape, shape)]
    if all(p == (0, 0) for p in pads):
        return x
    return jnp.pad(x, pads)


def _vmem_capacity_bytes():
    """Per-core VMEM capacity; conservative 64 MiB fallback (v7x) if the query is unavailable."""
    try:
        info = pltpu.get_tpu_info()
        cap = getattr(info, "vmem_capacity_bytes", None)
        if cap:
            return int(cap)
    except Exception:
        pass
    return 64 * 1024 * 1024


def _pick_q_tile(lq, lk_p, vmem_cap):
    """Target q-tile (multiple of 8, <=512) keeping ~4 live f32 (tq, lk_p) tiles within budget."""
    tile_budget = 12 * 1024 * 1024 if vmem_cap >= (96 << 20) else 4 * 1024 * 1024
    cap = tile_budget // (16 * max(lk_p, 1))          # 4 tiles * 4 bytes
    tq = max(8, min(512, (cap // 8) * 8))
    tq = min(tq, _round_up(lq, 8))
    return tq


def _per_head_vmem_bytes(tq, lk_p, d, dv, itemsize, has_mask, return_attn):
    """Rough per-head VMEM footprint: double-buffered blocks + live f32 intermediates."""
    b = 2 * (tq * d + lk_p * d + lk_p * dv + tq * dv) * itemsize
    if has_mask:
        b += 2 * tq * lk_p                            # int8 mask, double-buffered
    if return_attn:
        b += 2 * tq * lk_p * itemsize
    b += 4 * tq * lk_p * 4                            # logits / exp / attn f32 intermediates
    return b


def _pick_head_block(batch, per_head_bytes, budget_bytes):
    """Largest divisor of `batch` fitting the budget, keeping >=2 steps on the sharded axis."""
    best = 1
    for hb in range(1, batch + 1):
        if batch % hb:
            continue
        if hb * per_head_bytes > budget_bytes:
            break
        if batch >= 2 and batch // hb < 2:
            continue                                   # keep axis 0 splittable across 2 TCs (v7x)
        best = hb
    return best


def _sdpa_kernel(*refs, inv_temper, lk_valid, mask_pad_cols, has_mask, return_attn):
    it = iter(refs)
    q_ref = next(it)
    k_ref = next(it)
    v_ref = next(it)
    m_ref = next(it) if has_mask else None
    out_ref = next(it)
    attn_ref = next(it) if return_attn else None

    q = q_ref[...]                 # (HB, tq,   D)   native dtype -> MXU
    k = k_ref[...]                 # (HB, Lkp,  D)
    v = v_ref[...]                 # (HB, Lkp, Dv)

    # Fold the softmax temperature into the small (tq, D) q tile instead of the (tq, Lk) logits.
    qs = q * inv_temper

    # Batched q @ k^T over the head block; contraction over D, f32 accumulation on the MXU.
    logits = jnp.einsum("bqd,bkd->bqk", qs, k,
                        preferred_element_type=jnp.float32)        # (HB, tq, Lkp) f32

    # Single fused select for padded key columns + user mask.
    if mask_pad_cols or has_mask:
        if mask_pad_cols and has_mask:
            col = lax.broadcasted_iota(jnp.int32, logits.shape, 2)
            bad = (col >= lk_valid) | (m_ref[...] != 0)
        elif mask_pad_cols:
            col = lax.broadcasted_iota(jnp.int32, logits.shape, 2)
            bad = col >= lk_valid
        else:
            bad = m_ref[...] != 0
        logits = jnp.where(bad, -jnp.inf, logits)

    # Numerically-stable softmax over the key axis. Normalize with an EUP reciprocal (plus one
    # Newton step on the tiny (HB, tq, 1) column) and a broadcast multiply.
    # Note: fully-masked rows produce NaN, matching the reference softmax of an all -inf row.
    m = jnp.max(logits, axis=-1, keepdims=True)
    e = jnp.exp(logits - m)
    denom = jnp.sum(e, axis=-1, keepdims=True)
    inv = pl.reciprocal(denom, approx=True)
    inv = inv * (2.0 - denom * inv)
    attn = e * inv                                                  # (HB, tq, Lkp) f32

    # Second (batched) matmul with native-dtype probabilities, f32 accumulation.
    out = jnp.einsum("bqk,bkd->bqd", attn.astype(v.dtype), v,
                     preferred_element_type=jnp.float32)            # (HB, tq, Dv)

    out_ref[...] = out.astype(out_ref.dtype)
    if return_attn:
        attn_ref[...] = attn.astype(attn_ref.dtype)


def scaled_dot_product_attention(q, k, v, d_model, attn_mask=None, return_attn=True):
    """Pallas equivalent of ScaledDotProductAttention.forward(q, k, v, attn_mask) in eval mode."""
    B, Lq, D = q.shape
    Bk, Lk, Dk = k.shape
    Bv, Lkv, Dv = v.shape
    assert B == Bk == Bv and D == Dk and Lk == Lkv

    has_mask = attn_mask is not None
    itemsize = jnp.dtype(q.dtype).itemsize
    vmem_cap = _vmem_capacity_bytes()

    # Key axis: lane-dense (128-multiple) padding only when it pays off; otherwise just sublanes.
    Lk_p = _round_up(Lk, 128) if Lk >= 128 else _round_up(Lk, 8)

    # Pick the q tile first, then pad Lq up to a multiple of it (no degenerate tq for awkward Lq).
    tq = _pick_q_tile(Lq, Lk_p, vmem_cap)
    Lq_p = _round_up(Lq, tq)

    # Heads per grid step, bounded by a generation-aware VMEM budget.
    per_head = _per_head_vmem_bytes(tq, Lk_p, D, Dv, itemsize, has_mask, return_attn)
    HB = _pick_head_block(B, per_head, int(0.45 * vmem_cap))

    q_p = _pad_to(q, (B, Lq_p, D))
    k_p = _pad_to(k, (B, Lk_p, D))
    v_p = _pad_to(v, (B, Lk_p, Dv))

    inputs = [q_p, k_p, v_p]
    in_specs = [
        pl.BlockSpec((HB, tq, D), lambda h, i: (h, i, 0)),
        pl.BlockSpec((HB, Lk_p, D), lambda h, i: (h, 0, 0)),
        pl.BlockSpec((HB, Lk_p, Dv), lambda h, i: (h, 0, 0)),
    ]
    if has_mask:
        assert attn_mask.shape == (B, Lq, Lk)
        mask_p = _pad_to(attn_mask.astype(jnp.int8), (B, Lq_p, Lk_p))
        inputs.append(mask_p)
        in_specs.append(pl.BlockSpec((HB, tq, Lk_p), lambda h, i: (h, i, 0)))

    out_specs = [pl.BlockSpec((HB, tq, Dv), lambda h, i: (h, i, 0))]
    out_shapes = [jax.ShapeDtypeStruct((B, Lq_p, Dv), q.dtype)]
    if return_attn:
        out_specs.append(pl.BlockSpec((HB, tq, Lk_p), lambda h, i: (h, i, 0)))
        out_shapes.append(jax.ShapeDtypeStruct((B, Lq_p, Lk_p), q.dtype))

    kernel = functools.partial(
        _sdpa_kernel,
        inv_temper=1.0 / math.sqrt(float(d_model)),
        lk_valid=Lk,
        mask_pad_cols=(Lk_p != Lk),
        has_mask=has_mask,
        return_attn=return_attn,
    )

    # Generation-aware VMEM limit: enough for the resident blocks + intermediates, but always
    # leaving headroom (<= 75% of the per-core capacity: ~48 MiB on v7x, ~96 MiB on v5e/v6e).
    total = HB * per_head
    vmem_bytes = int(min(0.75 * vmem_cap, max(32 * 1024 * 1024, 2 * total)))

    grid = (B // HB, Lq_p // tq)

    res = pl.pallas_call(
        kernel,
        out_shape=tuple(out_shapes),
        grid=grid,
        in_specs=in_specs,
        out_specs=tuple(out_specs),
        compiler_params=pltpu.CompilerParams(
            dimension_semantics=("parallel", "arbitrary"),
            vmem_limit_bytes=vmem_bytes,
        ),
    )(*inputs)

    if return_attn:
        out_p, attn_p = res
        return out_p[:, :Lq, :], attn_p[:, :Lq, :Lk]
    out_p = res[0]
    return out_p[:, :Lq, :], None


def _reference(q, k, v, d_model, attn_mask=None):
    temper = math.sqrt(float(d_model))
    logits = jnp.einsum("bqd,bkd->bqk", q, k) / temper
    if attn_mask is not None:
        logits = jnp.where(attn_mask, -jnp.inf, logits)
    attn = jax.nn.softmax(logits, axis=-1)
    out = jnp.einsum("bqk,bkd->bqd", attn, v)
    return out, attn


if __name__ == "__main__":
    # Shapes consistent with the Decoder: mb_size=2, n_head=8 -> B = 16 batched heads,
    # len_q = len_k = 16, d_k = d_v = 64; the softmax temperature uses d_model = 512.
    mb_size, n_head = 2, 8
    B = mb_size * n_head
    Lq = Lk = 16
    D = Dv = 64
    d_model = 512

    key = jax.random.PRNGKey(0)
    kq, kk, kv, k2, v2, q3 = jax.random.split(key, 6)
    q = jax.random.normal(kq, (B, Lq, D), dtype=jnp.float32)
    k = jax.random.normal(kk, (B, Lk, D), dtype=jnp.float32)
    v = jax.random.normal(kv, (B, Lk, Dv), dtype=jnp.float32)

    # 1) unmasked eval-mode SDPA (encoder-decoder attention path with no padding).
    out, attn = scaled_dot_product_attention(q, k, v, d_model)
    out = jax.block_until_ready(out)
    attn = jax.block_until_ready(attn)
    ref_out, ref_attn = _reference(q, k, v, d_model)
    assert jnp.allclose(out, ref_out, atol=1e-4, rtol=1e-4), "output mismatch (no mask)"
    assert jnp.allclose(attn, ref_attn, atol=1e-4, rtol=1e-4), "attn mismatch (no mask)"

    # 2) masked SDPA (decoder self-attention subsequent / causal mask).
    causal = jnp.triu(jnp.ones((Lq, Lk), dtype=jnp.bool_), k=1)
    mask = jnp.broadcast_to(causal[None], (B, Lq, Lk))
    out_m, attn_m = scaled_dot_product_attention(q, k, v, d_model, attn_mask=mask)
    out_m = jax.block_until_ready(out_m)
    attn_m = jax.block_until_ready(attn_m)
    ref_out_m, ref_attn_m = _reference(q, k, v, d_model, attn_mask=mask)
    assert jnp.allclose(out_m, ref_out_m, atol=1e-4, rtol=1e-4), "output mismatch (masked)"
    assert jnp.allclose(attn_m, ref_attn_m, atol=1e-4, rtol=1e-4), "attn mismatch (masked)"

    # 3) ragged shapes + key-padding mask, output-only path (exercises Lq/Lk padding + no attn).
    B3, Lq3, Lk3 = 6, 12, 20
    q_r = jax.random.normal(q3, (B3, Lq3, D), dtype=jnp.float32)
    k_r = jax.random.normal(k2, (B3, Lk3, D), dtype=jnp.float32)
    v_r = jax.random.normal(v2, (B3, Lk3, Dv), dtype=jnp.float32)
    pad_mask = jnp.broadcast_to((jnp.arange(Lk3) >= 15)[None, None, :], (B3, Lq3, Lk3))
    out_r, _ = scaled_dot_product_attention(q_r, k_r, v_r, d_model,
                                            attn_mask=pad_mask, return_attn=False)
    out_r = jax.block_until_ready(out_r)
    ref_out_r, _ = _reference(q_r, k_r, v_r, d_model, attn_mask=pad_mask)
    assert jnp.allclose(out_r, ref_out_r, atol=1e-4, rtol=1e-4), "output mismatch (ragged/padded)"

    print("KERNEL_OK")
</pallas_src>

<mosaic_0001>
module attributes {stable_mosaic.version = 11 : i64} {
  func.func @_sdpa_kernel(%arg0: i32, %arg1: i32, %arg2: memref<8x16x64xf32, #tpu.memory_space<vmem>>, %arg3: memref<8x16x64xf32, #tpu.memory_space<vmem>>, %arg4: memref<8x16x64xf32, #tpu.memory_space<vmem>>, %arg5: memref<8x16x64xf32, #tpu.memory_space<vmem>>, %arg6: memref<8x16x16xf32, #tpu.memory_space<vmem>>) attributes {dimension_semantics = [#tpu.dimension_semantics<parallel>, #tpu.dimension_semantics<arbitrary>], iteration_bounds = array<i64: 2, 1>, scalar_prefetch = 0 : i64, scratch_operands = 0 : i64, tpu.core_type = #tpu.core_type<tc>, window_params = [{transform_indices = @transform_0, window_bounds = array<i64: 8, 16, 64>}, {transform_indices = @transform_1, window_bounds = array<i64: 8, 16, 64>}, {transform_indices = @transform_2, window_bounds = array<i64: 8, 16, 64>}, {transform_indices = @transform_3, window_bounds = array<i64: 8, 16, 64>}, {transform_indices = @transform_4, window_bounds = array<i64: 8, 16, 16>}]} {
    %c0 = arith.constant 0 : index
    %c0_0 = arith.constant 0 : index
    %c0_1 = arith.constant 0 : index
    %0 = vector.load %arg2[%c0, %c0_0, %c0_1] : memref<8x16x64xf32, #tpu.memory_space<vmem>>, vector<8x16x64xf32>
    %c0_2 = arith.constant 0 : index
    %c0_3 = arith.constant 0 : index
    %c0_4 = arith.constant 0 : index
    %1 = vector.load %arg3[%c0_2, %c0_3, %c0_4] : memref<8x16x64xf32, #tpu.memory_space<vmem>>, vector<8x16x64xf32>
    %c0_5 = arith.constant 0 : index
    %c0_6 = arith.constant 0 : index
    %c0_7 = arith.constant 0 : index
    %2 = vector.load %arg4[%c0_5, %c0_6, %c0_7] : memref<8x16x64xf32, #tpu.memory_space<vmem>>, vector<8x16x64xf32>
    %cst = arith.constant 0.0441941731 : f32
    %3 = vector.broadcast %cst : f32 to vector<8x16x64xf32>
    %4 = arith.mulf %0, %3 : vector<8x16x64xf32>
    "tpu.trace_start"() <{level = 10 : i32, message = "bqd,bkd->bqk"}> : () -> ()
    %cst_8 = arith.constant dense<0.000000e+00> : vector<8x16x16xf32>
    %5 = tpu.matmul %4, %1, %cst_8 {dimension_numbers = #tpu.dot_dimension_numbers<[2], [2], [1], [1], [0, 0, 0, 1, 1, 1], [0], [0]>} : vector<8x16x64xf32>, vector<8x16x64xf32>, vector<8x16x16xf32> -> vector<8x16x16xf32>
    "tpu.trace_stop"() : () -> ()
    %cst_9 = arith.constant dense<0xFF800000> : vector<8x16xf32>
    %6 = vector.multi_reduction <maximumf>, %5, %cst_9 [2] : vector<8x16x16xf32> to vector<8x16xf32>
    %7 = vector.shape_cast %6 : vector<8x16xf32> to vector<8x16x1xf32>
    %8 = vector.broadcast %7 : vector<8x16x1xf32> to vector<8x16x16xf32>
    %9 = arith.subf %5, %8 : vector<8x16x16xf32>
    %10 = math.exp %9 : vector<8x16x16xf32>
    %cst_10 = arith.constant dense<0.000000e+00> : vector<8x16xf32>
    %11 = vector.multi_reduction <add>, %10, %cst_10 [2] : vector<8x16x16xf32> to vector<8x16xf32>
    %12 = vector.shape_cast %11 : vector<8x16xf32> to vector<8x16x1xf32>
    %13 = tpu.reciprocal %12 {approx = true} : vector<8x16x1xf32> -> vector<8x16x1xf32>
    %14 = arith.mulf %12, %13 : vector<8x16x1xf32>
    %cst_11 = arith.constant 2.000000e+00 : f32
    %15 = vector.broadcast %cst_11 : f32 to vector<8x16x1xf32>
    %16 = arith.subf %15, %14 : vector<8x16x1xf32>
    %17 = arith.mulf %13, %16 : vector<8x16x1xf32>
    %18 = vector.broadcast %17 : vector<8x16x1xf32> to vector<8x16x16xf32>
    %19 = arith.mulf %10, %18 : vector<8x16x16xf32>
    "tpu.trace_start"() <{level = 10 : i32, message = "bqk,bkd->bqd"}> : () -> ()
    %cst_12 = arith.constant dense<0.000000e+00> : vector<8x16x64xf32>
    %20 = tpu.matmul %19, %2, %cst_12 {dimension_numbers = #tpu.dot_dimension_numbers<[2], [1], [1], [2], [0, 0, 0, 1, 1, 2], [0], [0]>} : vector<8x16x16xf32>, vector<8x16x64xf32>, vector<8x16x64xf32> -> vector<8x16x64xf32>
    "tpu.trace_stop"() : () -> ()
    %c0_13 = arith.constant 0 : index
    %c0_14 = arith.constant 0 : index
    %c0_15 = arith.constant 0 : index
    %21 = vector.load %arg5[%c0_13, %c0_14, %c0_15] : memref<8x16x64xf32, #tpu.memory_space<vmem>>, vector<8x16x64xf32>
    tpu.vector_store %arg5[%c0_13, %c0_14, %c0_15], %20 {strides = array<i32>} : memref<8x16x64xf32, #tpu.memory_space<vmem>>, vector<8x16x64xf32>,
    %c0_16 = arith.constant 0 : index
    %c0_17 = arith.constant 0 : index
    %c0_18 = arith.constant 0 : index
    %22 = vector.load %arg6[%c0_16, %c0_17, %c0_18] : memref<8x16x16xf32, #tpu.memory_space<vmem>>, vector<8x16x16xf32>
    tpu.vector_store %arg6[%c0_16, %c0_17, %c0_18], %19 {strides = array<i32>} : memref<8x16x16xf32, #tpu.memory_space<vmem>>, vector<8x16x16xf32>,
    return
  }
  func.func @transform_0(%arg0: i32, %arg1: i32) -> (i32, i32, i32) {
    %c0_i32 = arith.constant 0 : i32
    %c0_i32_0 = arith.constant 0 : i32
    return %arg0, %arg1, %c0_i32 : i32, i32, i32
  }
  func.func @transform_1(%arg0: i32, %arg1: i32) -> (i32, i32, i32) {
    %c0_i32 = arith.constant 0 : i32
    %c0_i32_0 = arith.constant 0 : i32
    %c0_i32_1 = arith.constant 0 : i32
    return %arg0, %c0_i32, %c0_i32_0 : i32, i32, i32
  }
  func.func @transform_2(%arg0: i32, %arg1: i32) -> (i32, i32, i32) {
    %c0_i32 = arith.constant 0 : i32
    %c0_i32_0 = arith.constant 0 : i32
    %c0_i32_1 = arith.constant 0 : i32
    return %arg0, %c0_i32, %c0_i32_0 : i32, i32, i32
  }
  func.func @transform_3(%arg0: i32, %arg1: i32) -> (i32, i32, i32) {
    %c0_i32 = arith.constant 0 : i32
    %c0_i32_0 = arith.constant 0 : i32
    return %arg0, %arg1, %c0_i32 : i32, i32, i32
  }
  func.func @transform_4(%arg0: i32, %arg1: i32) -> (i32, i32, i32) {
    %c0_i32 = arith.constant 0 : i32
    %c0_i32_0 = arith.constant 0 : i32
    return %arg0, %arg1, %c0_i32 : i32, i32, i32
  }
}

</mosaic_0001>

<bundles_post_ra>
// kernel: tpu_custom_call.1
= control target key start
LH: loop header
LB: loop body
LE: loop exit
PB: predicated region body
PF: predicated region fallthrough
CT: control target
= control target key end

     0   :  { %s3614_s0 = inlined_call_operand.hbm [shape: f32[16,16,64], index: 0, kind: input, shape index: {}]   ;;  %s3615_s1 = inlined_call_operand.hbm [shape: f32[16,16,64], index: 1, kind: input, shape index: {}]   ;;  %s3616_s2 = inlined_call_operand.hbm [shape: f32[16,16,64], index: 2, kind: input, shape index: {}]   ;;  %s3617_s3 = inlined_call_operand.hbm [shape: f32[16,16,64], index: 3, kind: output, shape index: {0}]   ;;  %s3618_s4 = inlined_call_operand.hbm [shape: f32[16,16,16], index: 4, kind: output, shape index: {1}]  }
   0x1   :  { %3630 = sst [smem:[#allocation19_spill]] %s3615_s1 }
   0x2   :  { %10 = vsyncpa [#allocation3], 0 }
   0x3   :  { %12 = vsyncpa [#allocation3 + $0x1], 0 }
   0x4   :  { %13 = vsyncpa [#allocation6], 0 }
   0x5   :  { %15 = vsyncpa [#allocation6 + $0x1], 0 }
   0x6   :  { %16 = vsyncpa [#allocation4], 0 }
   0x7   :  { %18 = vsyncpa [#allocation4 + $0x1], 0 }
   0x8   :  { %19 = vsyncpa [#allocation10], 0 }
   0x9   :  { %21 = vsyncpa [#allocation10 + $0x1], 0  ;;  %s2942_s15 = smov 0   ;;  %s2944_s16 = smov 0  }
   0xa   :  { %s2946_s17 = smov 0   ;;  %s2948_s18 = smov 0  }
   0xb   :  { %s2950_s19 = smov 0   ;;  %s2952_s20 = smov 0  }
   0xc LB: > { %3631 = sst [smem:[#allocation15_spill]] %s2902_s19  ;;  %s2973_s21 = sadd.s32 4294967295, %s2906_s20   ;;  %s2906_s20 = sphi %s2952_s20, %s27_s20   ;;  %s2902_s19 = sphi %s2950_s19, %s3658_s19   ;;  %s2898_s18 = sphi %s2948_s18, %s3657_s18   ;;  %s2894_s17 = sphi %s2946_s17, %s3661_s17   ;;  %s2890_s16 = sphi %s2944_s16, %s3660_s16   ;;  %s2886_s15 = sphi %s2942_s15, %s3659_s15  }
   0xd   : > { %3632 = sst [smem:[#allocation16_spill]] %s2906_s20  ;;  %s2208_s22 = sadd.s32 4294967294, %s2906_s20  }
   0xe   : > { %s39_s23 = sadd.s32 1, %s2902_s19  ;;  %s48_s24 = sadd.s32 1, %s2894_s17 }
   0xf   : > { %p41_p0 = scmp.ge.s32.totalorder %s39_s23, 2  ;;  %p55_p1 = scmp.ne.s32.totalorder %s2894_s17, %s2890_s16 }
  0x10   : > { %p56_p2 = scmp.eq.s32.totalorder %s2906_s20, 0  ;;  %p61_p3 = scmp.ne.s32.totalorder %s2890_s16, %s2886_s15 }
  0x11   : > { %s3663_s23 = smov (%p41_p0, %s39_s23), 0  ;;  %p62_p5 = scmp.eq.s32.totalorder %s2973_s21, 0 }
  0x12   : > { %3633 = sst [smem:[#allocation17_spill]] %s3663_s23  ;;  %p2985_p4 = por %p56_p2, %p55_p1 }
  0x13   : > { %s43_s26 = ssub.s32 %s2902_s19, %s3663_s23  ;;  %p139_p6 = scmp.eq.s32.totalorder %s2973_s21, 1 }
  0x14   : > { %p46_p7 = scmp.eq.s32.totalorder %s43_s26, 0  ;;  %p2993_p8 = por %p62_p5, %p61_p3 }
  0x15   : > { %p2997_p9 = por %p139_p6, %p55_p1  ;;  %p145_p10 = scmp.eq.s32.totalorder %s2208_s22, 1 }
  0x16   : > { %s3635_s27 = scalar_select %p2993_p8, 1, 0 }
  0x17   : > { %s3636_s28 = scalar_select %p2997_p9, 1, 0 }
  0x18   : > { %s3002_s29 = scalar_select %p46_p7, %s2894_s17, %s48_s24  }
  0x19   : > { %p3004_p11 = por %p145_p10, %p61_p3  ;;  %p2580_p13 = scmp.lt.s32.totalorder %s2906_s20, 2 }
  0x1a   : > { %3637 = sst [smem:[#allocation18_spill]] %s3002_s29  ;;  %s3619_s5 = sand.u32 1, %s2894_s17  }
  0x1b   : > { %s3638_s30 = scalar_select %p3004_p11, 1, 0 }
  0x1c   : > { %s3013_s6 = sshll.u32 %s3619_s5, 7  ;;  %s3016_s7 = sshll.u32 %s2902_s19, 11 }
  0x1d   : > { %p3020_p0 = pnand %p2580_p13, %p2985_p4  ;;  %s217_s9 = sand.u32 1, %s2906_s20  }
  0x1e   : > { %s3640_s1 = sld [smem:[#allocation19_spill]]  ;;  %s221_s13 = scalar_lea.vmem [#allocation5], %s3013_s6 }
  0x1f   : > { %s229_s14 = sshll.u32 %s221_s13, 4  ;;  %s3036_s22 = scalar_lea.sflag [#allocation6], %s217_s9  ;;  %s3033_s14 = int_to_ptr.vmem [resolvable:$true] %s229_s14 }
  0x20   : > { %p3042_p4 = pneg %p3020_p0 }
  0x24   : > { %s3029_s12 = scalar_lea.hbm %s3640_s1, %s3016_s7  ;;  %s2703_s11 = scalar_lea.hbm %s3640_s1, 4096 }
  0x25   : > { %s2698_s24 = scalar_lea.hbm %s3029_s12, 2048  ;;  %p2704_p7 = scmp.lt.u32.totalorder %s3029_s12, %s3640_s1 }
  0x26   : > { %p2699_p3 = scmp.ne.s32.totalorder %s3029_s12, %s2698_s24  ;;  %p2705_p10 = scmp.lt.u32.totalorder %s2703_s11, %s2698_s24 }
  0x27   : > { %p2707_p12 = scmp.lt.u32.totalorder %s2698_s24, %s3029_s12 }
  0x28   : > { %p2701_p5 = pnand %p3042_p4, %p2699_p3  ;;  %p2706_p13 = por %p2705_p10, %p2704_p7 }
  0x2a   : > { %p2702_p6 = pneg %p2701_p5  ;;  %p2708_p1 = por %p2707_p12, %p2706_p13 }
  0x2c   : > { %p2709_p2 = pnand %p2708_p1, %p2702_p6 }
  0x2e   : > { %2712 = shalt.err (!%p2709_p2)
}
  0x2f   : > { %s2713_s9 = scalar_lea.vmem %s3033_s14, 2048  ;;  %s2908_s26 = smov [#allocation5]  }
  0x30   : > { %p2714_p3 = scmp.ne.s32.totalorder %s3033_s14, %s2713_s9  ;;  %s2718_s10 = sshll.u32 %s2908_s26, 4  ;;  %s2719_s10 = int_to_ptr.vmem [resolvable:$false] %s2718_s10 }
  0x31   : > { %s2720_s5 = scalar_lea.vmem %s2719_s10, 4096  ;;  %p2721_p9 = scmp.lt.s32.totalorder %s3033_s14, %s2719_s10 }
  0x32   : > { %p2716_p5 = pnand %p2714_p3, %p3042_p4  ;;  %p2722_p8 = scmp.lt.s32.totalorder %s2720_s5, %s2713_s9 }
  0x34   : > { %p2717_p11 = pneg %p2716_p5  ;;  %p2723_p7 = por %p2722_p8, %p2721_p9 }
  0x36   : > { %p2724_p10 = pnand %p2723_p7, %p2717_p11 }
  0x38   : > { %2727 = shalt.err (!%p2724_p10)
}
  0x39   : > { %s3622_s24 = smov 128   ;;  %s3624_s11 = smov 8  }
  0x3a   : > { %2569 = dma.hbm_to_vmem [thread:$0]  (!%p3020_p0), %s3029_s12, 2048, %s3033_s14, %s3036_s22, %s3622_s24, %s3622_s24, %s3624_s11  }
  0x3b   : > { %p3642_p8 = scmp.lt.s32.totalorder %s2906_s20, 3  ;;  %p3643_p9 = scmp.ge.s32.totalorder %s2906_s20, 1 }
  0x3c   : > { %s3081_s10 = scalar_lea.hbm %s3614_s0, %s3016_s7  ;;  %s197_s5 = scalar_lea.vmem [#allocation2], %s3013_s6 }
  0x3d   : > { %p3073_p11 = pnand %p3643_p9, %p3642_p8  ;;  %s207_s1 = sshll.u32 %s197_s5, 4  ;;  %s3084_s1 = int_to_ptr.vmem [resolvable:$true] %s207_s1 }
  0x3e   : > { %s3090_s24 = scalar_lea.hbm %s3616_s2, %s3016_s7  ;;  %s3645_s11 = sand.u32 1, %s2894_s17  }
  0x3f   : > { %s3644_s13 = scalar_select %p3073_p11, 1, 0 }
  0x40   : > { %s3094_s23 = scalar_lea.sflag [#allocation3], %s3645_s11  ;;  %s2728_s19 = scalar_lea.hbm %s3081_s10, 2048 }
  0x41   : > { %p2729_p12 = scmp.ne.s32.totalorder %s3081_s10, %s2728_s19  ;;  %s2733_s29 = scalar_lea.hbm %s3614_s0, 4096 }
  0x42   : > { %p2734_p6 = scmp.lt.u32.totalorder %s3081_s10, %s3614_s0  ;;  %p2735_p13 = scmp.lt.u32.totalorder %s2733_s29, %s2728_s19 }
  0x43   : > { %p2731_p1 = pnand %p2729_p12, %p3042_p4  ;;  %p2737_p5 = scmp.lt.u32.totalorder %s2728_s19, %s3081_s10 }
  0x44   : > { %p2736_p3 = por %p2735_p13, %p2734_p6 }
  0x45   : > { %p2732_p2 = pneg %p2731_p1 }
  0x46   : > { %p2738_p7 = por %p2737_p5, %p2736_p3 }
  0x48   : > { %p2739_p10 = pnand %p2738_p7, %p2732_p2 }
  0x4a   : > { %2742 = shalt.err (!%p2739_p10)
}
  0x4b   : > { %s2743_s7 = scalar_lea.vmem %s3084_s1, 2048  ;;  %s2911_s11 = smov [#allocation2]  }
  0x4c   : > { %p2744_p8 = scmp.ne.s32.totalorder %s3084_s1, %s2743_s7  ;;  %s2748_s12 = sshll.u32 %s2911_s11, 4  ;;  %s2749_s12 = int_to_ptr.vmem [resolvable:$false] %s2748_s12 }
  0x4d   : > { %s2750_s20 = scalar_lea.vmem %s2749_s12, 4096  ;;  %p2751_p1 = scmp.lt.s32.totalorder %s3084_s1, %s2749_s12 }
  0x4e   : > { %p2746_p9 = pnand %p2744_p8, %p3042_p4  ;;  %p2752_p11 = scmp.lt.s32.totalorder %s2750_s20, %s2743_s7 }
  0x50   : > { %p2747_p12 = pneg %p2746_p9  ;;  %p2753_p6 = por %p2752_p11, %p2751_p1 }
  0x52   : > { %p2754_p13 = pnand %p2753_p6, %p2747_p12 }
  0x54   : > { %2757 = shalt.err (!%p2754_p13)
}
  0x55   : > { %s3646_s19 = smov 8   ;;  %s3647_s29 = smov 128  }
  0x56   : > { %2566 = dma.hbm_to_vmem [thread:$0]  (!%p3020_p0), %s3081_s10, 2048, %s3084_s1, %s3094_s23, %s3647_s29, %s3647_s29, %s3646_s19  }
  0x57   : > { %s243_s14 = scalar_lea.vmem [#allocation7], %s3013_s6  ;;  %s2758_s26 = scalar_lea.hbm %s3090_s24, 2048 }
  0x58   : > { %s251_s9 = sshll.u32 %s243_s14, 4  ;;  %p2759_p11 = scmp.ne.s32.totalorder %s3090_s24, %s2758_s26  ;;  %s3122_s9 = int_to_ptr.vmem [resolvable:$true] %s251_s9 }
  0x59   : > { %s2763_s11 = scalar_lea.hbm %s3616_s2, 4096  ;;  %p2764_p5 = scmp.lt.u32.totalorder %s3090_s24, %s3616_s2 }
  0x5a   : > { %p2761_p2 = pnand %p2759_p11, %p3042_p4  ;;  %p2765_p7 = scmp.lt.u32.totalorder %s2763_s11, %s2758_s26 }
  0x5b   : > { %p2767_p8 = scmp.lt.u32.totalorder %s2758_s26, %s3090_s24 }
  0x5c   : > { %p2762_p3 = pneg %p2761_p2  ;;  %p2766_p10 = por %p2765_p7, %p2764_p5 }
  0x5e   : > { %p2768_p9 = por %p2767_p8, %p2766_p10 }
  0x60   : > { %p2769_p12 = pnand %p2768_p9, %p2762_p3 }
  0x62   : > { %2772 = shalt.err (!%p2769_p12)
}
  0x63   : > { %s2773_s1 = scalar_lea.vmem %s3122_s9, 2048  ;;  %s2912_s23 = smov [#allocation7]  }
  0x64   : > { %p2774_p1 = scmp.ne.s32.totalorder %s3122_s9, %s2773_s1  ;;  %s2778_s6 = sshll.u32 %s2912_s23, 4  ;;  %s2779_s6 = int_to_ptr.vmem [resolvable:$false] %s2778_s6 }
  0x65   : > { %s2780_s10 = scalar_lea.vmem %s2779_s6, 4096  ;;  %p2781_p11 = scmp.lt.s32.totalorder %s3122_s9, %s2779_s6 }
  0x66   : > { %p2776_p6 = pnand %p2774_p1, %p3042_p4  ;;  %p2782_p2 = scmp.lt.s32.totalorder %s2780_s10, %s2773_s1 }
  0x68   : > { %p2777_p13 = pneg %p2776_p6  ;;  %p2783_p5 = por %p2782_p2, %p2781_p11 }
  0x6a   : > { %p2784_p7 = pnand %p2783_p5, %p2777_p13 }
  0x6c   : > { %2787 = shalt.err (!%p2784_p7)
}
  0x6d   : > { %2572 = dma.hbm_to_vmem [thread:$0]  (!%p3020_p0), %s3090_s24, 2048, %s3122_s9, %s3036_s22, %s3647_s29, %s3647_s29, %s3646_s19  }
  0x6e   : > { %p3648_p4 = scmp.ne.s32.totalorder %s3644_s13, 0 }
  0x6f   : > { %s3152_s25 = sand.u32 (!%p3648_p4), 1, %s2890_s16   ;;  %p3649_p3 = scmp.ne.s32.totalorder (!%p3648_p4), %s3635_s27, 0 }
  0x70   : > { %263 = sbr.rel (%p3648_p4) target bundleno = 925 (0x39d), region = 32  ;;  %s3155_s14 = sshll.u32 (!%p3648_p4), %s3152_s25, 7 }
  0x71   : > { %s266_s8 = scalar_lea.sflag (!%p3648_p4), [#allocation3], %s3152_s25  ;;  %s3159_s26 = scalar_lea.vmem (!%p3648_p4), [#allocation2], %s3155_s14 }
  0x77   : > { %2869 = dma.done.wait (%p3649_p3), %s266_s8, 2048  }
  0x78   : > { %2871 = vsyncadd (%p3649_p3), %s266_s8, 4294965248  ;;  %s274_s22 = sand.u32 1, %s2973_s21   ;;  %s3167_s13 = scalar_lea.vmem [#allocation5], %s3155_s14 }
  0x79   : > { %s275_s24 = scalar_lea.sflag [#allocation6], %s274_s22 }
  0x7a   : > { %2873 = dma.done.wait (%p3649_p3), %s275_s24, 4096  }
  0x7b   : > { %2875 = vsyncadd (%p3649_p3), %s275_s24, 4294963200  ;;  %vm399_vm0 = vcmask 523264   ;;  %v351_v1 = vld [vmem:[%s3167_s13] sm:$0xff]  ;;  %v352_v2 = vld [vmem:[%s3167_s13 + $0x8] sm:$0xff]  ;;  %vm1096_vm2 = vcmask 130048   ;;  %s3376_s21 = scalar_lea.vmem [#allocation7], %s3155_s14 }
  0x7c   : > { %vm3175_vm1 = vmpackc.low %vm399_vm0, %vm399_vm0  ;;  %v353_v3 = vld [vmem:[%s3167_s13 + $0x10] sm:$0xff]  ;;  %v2473_v4 = vpack.c.bf16 %v352_v2, %v351_v1  ;;  %v354_v5 = vld [vmem:[%s3167_s13 + $0x18] sm:$0xff]  ;;  %s3394_s27 = scalar_lea.vmem [#allocation9], %s3155_s14  ;;  %s2294_s19 = sshll.u32 %s2898_s18, 11 }
  0x7d   : > { %v335_v6 = vld [vmem:[%s3159_s26] sm:$0xff]  ;;  %v2479_v7 = vpack.c.bf16 %v354_v5, %v353_v3  ;;  %v337_v9 = vld [vmem:[%s3159_s26 + $0x10] sm:$0xff]  ;;  %v356_v12 = vld [vmem:[%s3167_s13 + $0x28] sm:$0xff]  ;;  %s3487_s5 = scalar_lea.hbm %s3618_s4, %s2294_s19  ;;  %s2042_s7 = sshll.u32 %s3394_s27, 4  ;;  %s3490_s7 = int_to_ptr.vmem [resolvable:$true] %s2042_s7 }
  0x7e   : > { %v383_v8 = vmul.f32 0.044194173, %v335_v6  ;;  %v355_v10 = vld [vmem:[%s3167_s13 + $0x20] sm:$0xff]  ;;  %2475 = vmatprep.subr.msk.bf16.mxu0 %vm3175_vm1, %v2473_v4  ;;  %v385_v11 = vmul.f32 0.044194173, %v337_v9  ;;  %v357_v13 = vld [vmem:[%s3167_s13 + $0x30] sm:$0xff] }
  0x7f   : > { %v358_v14 = vld [vmem:[%s3167_s13 + $0x38] sm:$0xff]  ;;  %2481 = vmatprep.subr.msk.bf16.mxu1 %vm3175_vm1, %v2479_v7  ;;  %2478 = vmatpush3.bf16.xpose.msk.msra.mxu0 %vm3175_vm1, %v2473_v4  ;;  %v336_v15 = vld [vmem:[%s3159_s26 + $0x8] sm:$0xff]  ;;  %v2485_v16 = vpack.c.bf16 %v356_v12, %v355_v10  ;;  %v341_v19 = vld [vmem:[%s3159_s26 + $0x30] sm:$0xff]  ;;  %s2007_s11 = scalar_lea.sflag [#allocation10], %s3152_s25  ;;  %s2788_s12 = scalar_lea.vmem %s3490_s7, 2048 }
  0x80   : > { %v2491_v17 = vpack.c.bf16 %v358_v14, %v357_v13  ;;  %2484 = vmatpush3.bf16.xpose.msk.msra.mxu1 %vm3175_vm1, %v2479_v7  ;;  %2365 = vmatprep.mubr.msk.f32.mxu0 %vm399_vm0, %v383_v8  ;;  %v338_v18 = vld [vmem:[%s3159_s26 + $0x18] sm:$0xff]  ;;  %v384_v20 = vmul.f32 0.044194173, %v336_v15  ;;  %v339_v21 = vld [vmem:[%s3159_s26 + $0x20] sm:$0xff]  ;;  %v360_v23 = vld [vmem:[%s3167_s13 + $0x48] sm:$0xff]  ;;  %p2789_p0 = scmp.ne.s32.totalorder %s3490_s7, %s2788_s12  ;;  %p3652_p10 = scmp.ne.s32.totalorder %s3636_s28, 0 }
  0x81   : > { %2372 = vmatprep.mubr.msk.f32.mxu1 %vm399_vm0, %v385_v11  ;;  %2487 = vmatprep.subr.msk.bf16.mxu0 %vm3175_vm1, %v2485_v16  ;;  %v359_v22 = vld [vmem:[%s3167_s13 + $0x40] sm:$0xff]  ;;  %v386_v24 = vmul.f32 0.044194173, %v338_v18  ;;  %v361_v25 = vld [vmem:[%s3167_s13 + $0x50] sm:$0xff]  ;;  %v362_v26 = vld [vmem:[%s3167_s13 + $0x58] sm:$0xff]  ;;  %s2913_s20 = smov [#allocation9]  }
  0x82   : > { %2493 = vmatprep.subr.msk.bf16.mxu1 %vm3175_vm1, %v2491_v17  ;;  %v389_v27 = vmul.f32 0.044194173, %v341_v19  ;;  %v387_v28 = vmul.f32 0.044194173, %v339_v21  ;;  %v2497_v29 = vpack.c.bf16 %v360_v23, %v359_v22  ;;  %v2503_v30 = vpack.c.bf16 %v362_v26, %v361_v25  ;;  %v340_v31 = vld [vmem:[%s3159_s26 + $0x28] sm:$0xff]  ;;  %v342_v32 = vld [vmem:[%s3159_s26 + $0x38] sm:$0xff]  ;;  %p2790_p8 = pnand %p2789_p0, %p3652_p10 }
  0x83   : > { %v345_v33 = vld [vmem:[%s3159_s26 + $0x50] sm:$0xff]  ;;  %v388_v34 = vmul.f32 0.044194173, %v340_v31  ;;  %v343_v35 = vld [vmem:[%s3159_s26 + $0x40] sm:$0xff]  ;;  %v364_v37 = vld [vmem:[%s3167_s13 + $0x68] sm:$0xff]  ;;  %s2792_s1 = sshll.u32 %s2913_s20, 4  ;;  %s2793_s1 = int_to_ptr.vmem [resolvable:$false] %s2792_s1 }
  0x84   : > { %v363_v36 = vld [vmem:[%s3167_s13 + $0x60] sm:$0xff]  ;;  %v390_v38 = vmul.f32 0.044194173, %v342_v32  ;;  %v365_v39 = vld [vmem:[%s3167_s13 + $0x70] sm:$0xff]  ;;  %v366_v40 = vld [vmem:[%s3167_s13 + $0x78] sm:$0xff]  ;;  %p2791_p9 = pneg %p2790_p8  ;;  %s2794_s23 = scalar_lea.vmem %s2793_s1, 4096 }
  0x85   : > { %v393_v41 = vmul.f32 0.044194173, %v345_v33  ;;  %v391_v42 = vmul.f32 0.044194173, %v343_v35  ;;  %v2509_v43 = vpack.c.bf16 %v364_v37, %v363_v36  ;;  %v2515_v44 = vpack.c.bf16 %v366_v40, %v365_v39  ;;  %v344_v45 = vld [vmem:[%s3159_s26 + $0x48] sm:$0xff]  ;;  %v346_v46 = vld [vmem:[%s3159_s26 + $0x58] sm:$0xff]  ;;  %p2795_p12 = scmp.lt.s32.totalorder %s3490_s7, %s2793_s1  ;;  %p2796_p1 = scmp.lt.s32.totalorder %s2794_s23, %s2788_s12 }
  0x86   : > { %2366 = vmatmul.mubr.msk.f32.vlgmr.msra.gmra.mrb[0].mxu0 %vm399_vm0, %v384_v20  ;;  %v347_v47 = vld [vmem:[%s3159_s26 + $0x60] sm:$0xff]  ;;  %v392_v48 = vmul.f32 0.044194173, %v344_v45  ;;  %v349_v49 = vld [vmem:[%s3159_s26 + $0x70] sm:$0xff]  ;;  %v394_v50 = vmul.f32 0.044194173, %v346_v46 }
  0x87   : > { %2373 = vmatmul.mubr.msk.f32.vlgmr.msra.gmra.mrb[0].mxu1 %vm399_vm0, %v386_v24  ;;  %2490 = vmatpush3.bf16.xpose.msk.msra.mxu0 %vm3175_vm1, %v2485_v16  ;;  %v395_v51 = vmul.f32 0.044194173, %v347_v47  ;;  %v397_v52 = vmul.f32 0.044194173, %v349_v49  ;;  %v348_v53 = vld [vmem:[%s3159_s26 + $0x68] sm:$0xff]  ;;  %v350_v54 = vld [vmem:[%s3159_s26 + $0x78] sm:$0xff]  ;;  %p2797_p6 = por %p2796_p1, %p2795_p12 }
  0x88   : > { %2496 = vmatpush3.bf16.xpose.msk.msra.mxu1 %vm3175_vm1, %v2491_v17  ;;  %2386 = vmatprep.mubr.msk.f32.mxu1 %vm399_vm0, %v389_v27  ;;  %v396_v55 = vmul.f32 0.044194173, %v348_v53  ;;  %v398_v56 = vmul.f32 0.044194173, %v350_v54 }
  0x89   : > { %2379 = vmatprep.mubr.msk.f32.mxu0 %vm399_vm0, %v387_v28  ;;  %2499 = vmatprep.subr.msk.bf16.mxu0 %vm3175_vm1, %v2497_v29  ;;  %p2798_p13 = pnand %p2797_p6, %p2791_p9 }
  0x8a   : > { %2505 = vmatprep.subr.msk.bf16.mxu1 %vm3175_vm1, %v2503_v30 }
  0x8e   : > { %2380 = vmatmul.mubr.msk.f32.vlgmr.msra.gmra.mrb[2].mxu0 %vm399_vm0, %v388_v34 }
  0x8f   : > { %2387 = vmatmul.mubr.msk.f32.vlgmr.msra.gmra.mrb[2].mxu1 %vm399_vm0, %v390_v38  ;;  %2502 = vmatpush3.bf16.xpose.msk.msra.mxu0 %vm3175_vm1, %v2497_v29 }
  0x90   : > { %2508 = vmatpush3.bf16.xpose.msk.msra.mxu1 %vm3175_vm1, %v2503_v30  ;;  %2400 = vmatprep.mubr.msk.f32.mxu1 %vm399_vm0, %v393_v41 }
  0x91   : > { %2393 = vmatprep.mubr.msk.f32.mxu0 %vm399_vm0, %v391_v42  ;;  %2511 = vmatprep.subr.msk.bf16.mxu0 %vm3175_vm1, %v2509_v43 }
  0x92   : > { %2517 = vmatprep.subr.msk.bf16.mxu1 %vm3175_vm1, %v2515_v44 }
  0x96   : > { %2394 = vmatmul.mubr.msk.f32.vlgmr.msra.gmra.mrb[4].mxu0 %vm399_vm0, %v392_v48 }
  0x97   : > { %2401 = vmatmul.mubr.msk.f32.vlgmr.msra.gmra.mrb[4].mxu1 %vm399_vm0, %v394_v50  ;;  %2514 = vmatpush3.bf16.xpose.msk.msra.mxu0 %vm3175_vm1, %v2509_v43 }
  0x98   : > { %2520 = vmatpush3.bf16.xpose.msk.msra.mxu1 %vm3175_vm1, %v2515_v44  ;;  %2407 = vmatprep.mubr.msk.f32.mxu0 %vm399_vm0, %v395_v51 }
  0x99   : > { %2414 = vmatprep.mubr.msk.f32.mxu1 %vm399_vm0, %v397_v52 }
  0x9e   : > { %2408 = vmatmul.mubr.msk.f32.vlgmr.msra.gmra.mrb[6].mxu0 %vm399_vm0, %v396_v55 }
  0x9f   : > { %2415 = vmatmul.mubr.msk.f32.vlgmr.msra.gmra.mrb[6].mxu1 %vm399_vm0, %v398_v56 }
 0x159   : > { %v2367_v57 = vpop.f32.mrb[0].mxu0 }
 0x15a   : > { %v478_v58 = vpop.f32.mrb[1].mxu0  ;;  %v1100_v59 = vsel %vm1096_vm2, %v2367_v57, -inf  ;;  %v2374_v60 = vpop.f32.mrb[0].mxu1 }
 0x15b   : > { %1101 = vmax.xlane.f32.xlu1 %v1100_v59  ;;  %v1097_v61 = vsel %vm1096_vm2, %v478_v58, -inf  ;;  %v565_v62 = vpop.f32.mrb[1].mxu1  ;;  %v1106_v63 = vsel %vm1096_vm2, %v2374_v60, -inf }
 0x15c   : > { %1098 = vmax.xlane.f32.xlu0 %v1097_v61  ;;  %v1103_v0 = vsel %vm1096_vm2, %v565_v62, -inf }
 0x15f   : > { %1107 = vmax.xlane.f32.xlu1 %v1106_v63 }
 0x160   : > { %1104 = vmax.xlane.f32.xlu0 %v1103_v0 }
 0x161   : > { %v2381_v1 = vpop.f32.mrb[2].mxu0 }
 0x162   : > { %v2388_v2 = vpop.f32.mrb[2].mxu1  ;;  %v1112_v3 = vsel %vm1096_vm2, %v2381_v1, -inf  ;;  %v3264_v4 = vpop.f32.mrb[3].mxu0 }
 0x163   : > { %v1118_v5 = vsel %vm1096_vm2, %v2388_v2, -inf  ;;  %v739_v6 = vpop.f32.mrb[3].mxu1  ;;  %v1109_v8 = vsel %vm1096_vm2, %v3264_v4, -inf }
 0x164   : > { %1119 = vmax.xlane.f32.xlu1 %v1118_v5  ;;  %1113 = vmax.xlane.f32.xlu0 %v1112_v3  ;;  %v1115_v7 = vsel %vm1096_vm2, %v739_v6, -inf }
 0x168   : > { %1116 = vmax.xlane.f32.xlu1 %v1115_v7  ;;  %1110 = vmax.xlane.f32.xlu0 %v1109_v8 }
 0x169   : > { %v3270_v9 = vpop.f32.mrb[4].mxu0 }
 0x16a   : > { %v3272_v10 = vpop.f32.mrb[4].mxu1  ;;  %v1124_v11 = vsel %vm1096_vm2, %v3270_v9, -inf  ;;  %v3276_v12 = vpop.f32.mrb[5].mxu0 }
 0x16b   : > { %v1130_v13 = vsel %vm1096_vm2, %v3272_v10, -inf  ;;  %v3280_v14 = vpop.f32.mrb[5].mxu1  ;;  %v1121_v16 = vsel %vm1096_vm2, %v3276_v12, -inf }
 0x16c   : > { %1131 = vmax.xlane.f32.xlu1 %v1130_v13  ;;  %1125 = vmax.xlane.f32.xlu0 %v1124_v11  ;;  %v1127_v15 = vsel %vm1096_vm2, %v3280_v14, -inf }
 0x170   : > { %1128 = vmax.xlane.f32.xlu1 %v1127_v15  ;;  %1122 = vmax.xlane.f32.xlu0 %v1121_v16 }
 0x171   : > { %v3286_v17 = vpop.f32.mrb[6].mxu0 }
 0x172   : > { %v3288_v18 = vpop.f32.mrb[6].mxu1  ;;  %v3290_v19 = vpop.f32.mrb[7].mxu0  ;;  %v1136_v23 = vsel %vm1096_vm2, %v3286_v17, -inf }
 0x173   : > { %v3292_v20 = vpop.f32.mrb[7].mxu1  ;;  %v1133_v21 = vsel %vm1096_vm2, %v3290_v19, -inf  ;;  %v1142_v24 = vsel %vm1096_vm2, %v3288_v18, -inf }
 0x174   : > { %v1139_v22 = vsel %vm1096_vm2, %v3292_v20, -inf  ;;  %1134 = vmax.xlane.f32.xlu0 %v1133_v21 }
 0x175   : > { %1140 = vmax.xlane.f32.xlu1 %v1139_v22 }
 0x178   : > { %1137 = vmax.xlane.f32.xlu0 %v1136_v23 }
 0x179   : > { %1143 = vmax.xlane.f32.xlu1 %v1142_v24 }
 0x1e8   : > { %v1102_v25 = vpop.xlane.xlu1 %1101 }
 0x1e9   : > { %v1146_v26 = vsub.f32 %v2367_v57, %v1102_v25  ;;  %v1099_v27 = vpop.xlane.xlu0 %1098 }
 0x1ea   : > { %v1145_v28 = vsub.f32 %v478_v58, %v1099_v27 }
 0x1eb   : > { %v1163_v29 = vmul.f32 1.442695, %v1146_v26 }
 0x1ec   : > { %v1161_v30 = vmul.f32 1.442695, %v1145_v28  ;;  %v1108_v31 = vpop.xlane.xlu1 %1107 }
 0x1ed   : > { %2634 = vpow2.f32 %v1163_v29  ;;  %v1148_v32 = vsub.f32 %v2374_v60, %v1108_v31  ;;  %v1105_v33 = vpop.xlane.xlu0 %1104 }
 0x1ee   : > { %v1147_v34 = vsub.f32 %v565_v62, %v1105_v33  ;;  %2636 = vpow2.f32 %v1161_v30 }
 0x1ef   : > { %v1167_v35 = vmul.f32 1.442695, %v1148_v32 }
 0x1f0   : > { %v1165_v36 = vmul.f32 1.442695, %v1147_v34 }
 0x1f1   : > { %2638 = vpow2.f32 %v1167_v35  ;;  %v1120_v37 = vpop.xlane.xlu1 %1119  ;;  %v1114_v38 = vpop.xlane.xlu0 %1113 }
 0x1f2   : > { %v1152_v39 = vsub.f32 %v2388_v2, %v1120_v37  ;;  %v1150_v40 = vsub.f32 %v2381_v1, %v1114_v38  ;;  %2640 = vpow2.f32 %v1165_v36 }
 0x1f4   : > { %v1175_v41 = vmul.f32 1.442695, %v1152_v39  ;;  %v1171_v42 = vmul.f32 1.442695, %v1150_v40 }
 0x1f5   : > { %v1117_v43 = vpop.xlane.xlu1 %1116  ;;  %v1111_v44 = vpop.xlane.xlu0 %1110 }
 0x1f6   : > { %2642 = vpow2.f32 %v1175_v41  ;;  %v1151_v45 = vsub.f32 %v739_v6, %v1117_v43  ;;  %v1149_v46 = vsub.f32 %v3264_v4, %v1111_v44  ;;  %v367_v41 = vld [vmem:[%s3376_s21] sm:$0xff]  ;;  %v369_v44 = vld [vmem:[%s3376_s21 + $0x10] sm:$0xff] }
 0x1f7   : > { %v3303_v47 = vpop.eup %2634  ;;  %2644 = vpow2.f32 %v1171_v42  ;;  %v368_v42 = vld [vmem:[%s3376_s21 + $0x8] sm:$0xff] }
 0x1f8   : > { %v1173_v48 = vmul.f32 1.442695, %v1151_v45  ;;  %v1169_v49 = vmul.f32 1.442695, %v1149_v46  ;;  %v1196_v50 = vsel %vm1096_vm2, %v3303_v47, 0.0  ;;  %v3307_v51 = vpop.eup %2636  ;;  %v2521_v43 = vpack.c.bf16 %v368_v42, %v367_v41  ;;  %v370_v45 = vld [vmem:[%s3376_s21 + $0x18] sm:$0xff] }
 0x1f9   : > { %v1132_v52 = vpop.xlane.xlu1 %1131  ;;  %v1126_v53 = vpop.xlane.xlu0 %1125  ;;  %1197 = vadd.xlane.f32.xlu0 %v1196_v50  ;;  %v1193_v60 = vsel %vm1096_vm2, %v3307_v51, 0.0  ;;  %v2525_v46 = vpack.c.bf16 %v370_v45, %v369_v44 }
 0x1fa   : > { %2646 = vpow2.f32 %v1173_v48  ;;  %v1156_v54 = vsub.f32 %v3272_v10, %v1132_v52  ;;  %v1154_v55 = vsub.f32 %v3270_v9, %v1126_v53  ;;  %2522 = vmatprep.subr.bf16.mxu0 %v2521_v43  ;;  %v371_v48 = vld [vmem:[%s3376_s21 + $0x20] sm:$0xff]  ;;  %v373_v52 = vld [vmem:[%s3376_s21 + $0x30] sm:$0xff]  ;;  %v374_v53 = vld [vmem:[%s3376_s21 + $0x38] sm:$0xff] }
 0x1fb   : > { %v3311_v56 = vpop.eup %2638  ;;  %2648 = vpow2.f32 %v1169_v49  ;;  %2524 = vmatpush3.bf16.msra.mxu0 %v2521_v43  ;;  %2526 = vmatprep.subr.bf16.mxu1 %v2525_v46  ;;  %v372_v49 = vld [vmem:[%s3376_s21 + $0x28] sm:$0xff]  ;;  %v378_v43 = vld [vmem:[%s3376_s21 + $0x58] sm:$0xff] }
 0x1fc   : > { %v1183_v57 = vmul.f32 1.442695, %v1156_v54  ;;  %v1179_v58 = vmul.f32 1.442695, %v1154_v55  ;;  %v1202_v59 = vsel %vm1096_vm2, %v3311_v56, 0.0  ;;  %v3317_v61 = vpop.eup %2640  ;;  %2528 = vmatpush3.bf16.msra.mxu1 %v2525_v46  ;;  %v3384_v50 = vpack.c.bf16 %v372_v49, %v371_v48 }
 0x1fd   : > { %v1129_v62 = vpop.xlane.xlu1 %1128  ;;  %1203 = vadd.xlane.f32.xlu1 %v1202_v59  ;;  %v1123_v63 = vpop.xlane.xlu0 %1122  ;;  %1194 = vadd.xlane.f32.xlu0 %v1193_v60  ;;  %v1199_v5 = vsel %vm1096_vm2, %v3317_v61, 0.0  ;;  %v3389_v54 = vpack.c.bf16 %v374_v53, %v373_v52 }
 0x1fe   : > { %2650 = vpow2.f32 %v1183_v57  ;;  %v1155_v0 = vsub.f32 %v3280_v14, %v1129_v62  ;;  %v1153_v1 = vsub.f32 %v3276_v12, %v1123_v63  ;;  %2530 = vmatprep.subr.bf16.mxu0 %v3384_v50 }
 0x1ff   : > { %2652 = vpow2.f32 %v1179_v58  ;;  %2534 = vmatprep.subr.bf16.mxu1 %v3389_v54 }
 0x200   : > { %v3321_v2 = vpop.eup %2642  ;;  %v1181_v3 = vmul.f32 1.442695, %v1155_v0  ;;  %v1177_v4 = vmul.f32 1.442695, %v1153_v1 }
 0x201   : > { %v3325_v6 = vpop.eup %2644  ;;  %1200 = vadd.xlane.f32.xlu1 %v1199_v5  ;;  %v1135_v7 = vpop.xlane.xlu0 %1134  ;;  %v1214_v14 = vsel %vm1096_vm2, %v3321_v2, 0.0 }
 0x202   : > { %2654 = vpow2.f32 %v1181_v3  ;;  %v1141_v8 = vpop.xlane.xlu1 %1140  ;;  %v1157_v9 = vsub.f32 %v3290_v19, %v1135_v7  ;;  %v1208_v10 = vsel %vm1096_vm2, %v3325_v6, 0.0 }
 0x203   : > { %2656 = vpow2.f32 %v1177_v4  ;;  %v1159_v11 = vsub.f32 %v3292_v20, %v1141_v8  ;;  %1209 = vadd.xlane.f32.xlu0 %v1208_v10 }
 0x204   : > { %v3331_v12 = vpop.eup %2646  ;;  %v1185_v13 = vmul.f32 1.442695, %v1157_v9 }
 0x205   : > { %v3335_v15 = vpop.eup %2648  ;;  %v1189_v16 = vmul.f32 1.442695, %v1159_v11  ;;  %1215 = vadd.xlane.f32.xlu1 %v1214_v14  ;;  %v1138_v21 = vpop.xlane.xlu0 %1137  ;;  %v1211_v26 = vsel %vm1096_vm2, %v3331_v12, 0.0 }
 0x206   : > { %2658 = vpow2.f32 %v1185_v13  ;;  %v1144_v19 = vpop.xlane.xlu1 %1143  ;;  %v1158_v22 = vsub.f32 %v3286_v17, %v1138_v21  ;;  %v1205_v23 = vsel %vm1096_vm2, %v3335_v15, 0.0 }
 0x207   : > { %2660 = vpow2.f32 %v1189_v16  ;;  %v1160_v20 = vsub.f32 %v3288_v18, %v1144_v19  ;;  %1206 = vadd.xlane.f32.xlu0 %v1205_v23 }
 0x208   : > { %v3341_v24 = vpop.eup %2650  ;;  %v1187_v25 = vmul.f32 1.442695, %v1158_v22 }
 0x209   : > { %v3345_v27 = vpop.eup %2652  ;;  %v1191_v28 = vmul.f32 1.442695, %v1160_v20  ;;  %1212 = vadd.xlane.f32.xlu1 %v1211_v26  ;;  %v1226_v18 = vsel %vm1096_vm2, %v3341_v24, 0.0  ;;  %v375_v26 = vld [vmem:[%s3376_s21 + $0x40] sm:$0xff] }
 0x20a   : > { %2662 = vpow2.f32 %v1187_v25  ;;  %v1220_v17 = vsel %vm1096_vm2, %v3345_v27, 0.0 }
 0x20b   : > { %2664 = vpow2.f32 %v1191_v28  ;;  %1221 = vadd.xlane.f32.xlu0 %v1220_v17 }
 0x20c   : > { %v3349_v29 = vpop.eup %2654 }
 0x20d   : > { %v3353_v30 = vpop.eup %2656  ;;  %1227 = vadd.xlane.f32.xlu1 %v1226_v18  ;;  %v1223_v33 = vsel %vm1096_vm2, %v3349_v29, 0.0 }
 0x20e   : > { %v1217_v31 = vsel %vm1096_vm2, %v3353_v30, 0.0 }
 0x20f   : > { %1218 = vadd.xlane.f32.xlu0 %v1217_v31 }
 0x210   : > { %v3357_v32 = vpop.eup %2658 }
 0x211   : > { %v3361_v34 = vpop.eup %2660  ;;  %1224 = vadd.xlane.f32.xlu1 %v1223_v33  ;;  %v1229_v35 = vsel %vm1096_vm2, %v3357_v32, 0.0 }
 0x212   : > { %v1235_v37 = vsel %vm1096_vm2, %v3361_v34, 0.0 }
 0x213   : > { %1230 = vadd.xlane.f32.xlu0 %v1229_v35 }
 0x214   : > { %v3365_v36 = vpop.eup %2662 }
 0x215   : > { %v3369_v38 = vpop.eup %2664  ;;  %1236 = vadd.xlane.f32.xlu1 %v1235_v37  ;;  %v1232_v39 = vsel %vm1096_vm2, %v3365_v36, 0.0 }
 0x216   : > { %v1238_v40 = vsel %vm1096_vm2, %v3369_v38, 0.0 }
 0x217   : > { %1233 = vadd.xlane.f32.xlu0 %v1232_v39 }
 0x219   : > { %1239 = vadd.xlane.f32.xlu1 %v1238_v40 }
 0x286   : > { %v1198_v55 = vpop.xlane.xlu0 %1197 }
 0x287   : > { %2666 = vrcp.f32 %v1198_v55 }
 0x28a   : > { %v1204_v57 = vpop.xlane.xlu1 %1203  ;;  %v1195_v58 = vpop.xlane.xlu0 %1194 }
 0x28b   : > { %2668 = vrcp.f32 %v1204_v57 }
 0x28c   : > { %2670 = vrcp.f32 %v1195_v58 }
 0x28e   : > { %v1201_v59 = vpop.xlane.xlu1 %1200 }
 0x28f   : > { %2672 = vrcp.f32 %v1201_v59 }
 0x290   : > { %v1210_v60 = vpop.xlane.xlu0 %1209 }
 0x291   : > { %v2667_v62 = vpop.eup %2666  ;;  %2674 = vrcp.f32 %v1210_v60 }
 0x292   : > { %v1258_v63 = vmul.f32 %v2667_v62, %v1198_v55  ;;  %v1216_v0 = vpop.xlane.xlu1 %1215 }
 0x293   : > { %2676 = vrcp.f32 %v1216_v0 }
 0x294   : > { %v1274_v1 = vsub.f32 2.0, %v1258_v63  ;;  %v1207_v3 = vpop.xlane.xlu0 %1206 }
 0x295   : > { %v2669_v4 = vpop.eup %2668  ;;  %2678 = vrcp.f32 %v1207_v3 }
 0x296   : > { %v2671_v5 = vpop.eup %2670  ;;  %v1290_v7 = vmul.f32 %v2667_v62, %v1274_v1  ;;  %v1260_v8 = vmul.f32 %v2669_v4, %v1204_v57  ;;  %v1213_v9 = vpop.xlane.xlu1 %1212  ;;  %v379_v1 = vld [vmem:[%s3376_s21 + $0x60] sm:$0xff] }
 0x297   : > { %v1257_v10 = vmul.f32 %v2671_v5, %v1195_v58  ;;  %2680 = vrcp.f32 %v1213_v9 }
 0x298   : > { %v1306_v11 = vmul.f32 %v3303_v47, %v1290_v7  ;;  %v1276_v13 = vsub.f32 2.0, %v1260_v8  ;;  %v1222_v14 = vpop.xlane.xlu0 %1221  ;;  %v376_v47 = vld [vmem:[%s3376_s21 + $0x48] sm:$0xff] }
 0x299   : > { %v2673_v16 = vpop.eup %2672  ;;  %v1273_v21 = vsub.f32 2.0, %v1257_v10  ;;  %2682 = vrcp.f32 %v1222_v14  ;;  %v3409_v42 = vpack.c.bf16 %v376_v47, %v375_v26  ;;  %v381_v10 = vld [vmem:[%s3376_s21 + $0x70] sm:$0xff] }
 0x29a   : > { %1986 = vst.msk [vmem:[%s3394_s27 + $0x8] sm:$0xff] %vm1096_vm2, %v1306_v11  ;;  %v1292_v19 = vmul.f32 %v2669_v4, %v1276_v13  ;;  %v1259_v22 = vmul.f32 %v2673_v16, %v1201_v59  ;;  %v1228_v23 = vpop.xlane.xlu1 %1227 }
 0x29b   : > { %v2675_v20 = vpop.eup %2674  ;;  %v1289_v25 = vmul.f32 %v2671_v5, %v1273_v21  ;;  %2684 = vrcp.f32 %v1228_v23 }
 0x29c   : > { %v1308_v28 = vmul.f32 %v3311_v56, %v1292_v19  ;;  %v1275_v17 = vsub.f32 2.0, %v1259_v22  ;;  %v1262_v18 = vmul.f32 %v2675_v20, %v1210_v60  ;;  %v3401_v31 = vpop.xlane.xlu0 %1218  ;;  %v377_v56 = vld [vmem:[%s3376_s21 + $0x50] sm:$0xff] }
 0x29d   : > { %v2677_v33 = vpop.eup %2676  ;;  %v1305_v35 = vmul.f32 %v3307_v51, %v1289_v25  ;;  %2686 = vrcp.f32 %v3401_v31  ;;  %v2541_v53 = vpack.c.bf16 %v378_v43, %v377_v56 }
 0x29e   : > { %1988 = vst.msk [vmem:[%s3394_s27 + $0x18] sm:$0xff] %vm1096_vm2, %v1308_v28  ;;  %v1291_v37 = vmul.f32 %v2673_v16, %v1275_v17  ;;  %v1278_v39 = vsub.f32 2.0, %v1262_v18  ;;  %v1264_v40 = vmul.f32 %v2677_v33, %v1216_v0  ;;  %v3407_v41 = vpop.xlane.xlu1 %1224 }
 0x29f   : > { %v2679_v44 = vpop.eup %2678  ;;  %1985 = vst.msk [vmem:[%s3394_s27] sm:$0xff] %vm1096_vm2, %v1305_v35  ;;  %2688 = vrcp.f32 %v3407_v41  ;;  %2421 = vmatprep.mubr.msk.f32.mxu0 %vm1096_vm2, %v1305_v35 }
 0x2a0   : > { %v1307_v51 = vmul.f32 %v3317_v61, %v1291_v37  ;;  %v1294_v45 = vmul.f32 %v2675_v20, %v1278_v39  ;;  %v1280_v46 = vsub.f32 2.0, %v1264_v40  ;;  %v1261_v48 = vmul.f32 %v2679_v44, %v1207_v3  ;;  %2422 = vmatmul.mubr.msk.f32.vlgmr.msra.gmra.mrb[8].mxu0 %vm1096_vm2, %v1306_v11  ;;  %v1231_v49 = vpop.xlane.xlu0 %1230  ;;  %v380_v3 = vld [vmem:[%s3376_s21 + $0x68] sm:$0xff]  ;;  %v382_v11 = vld [vmem:[%s3376_s21 + $0x78] sm:$0xff] }
 0x2a1   : > { %v2681_v52 = vpop.eup %2680  ;;  %2690 = vrcp.f32 %v1231_v49  ;;  %2532 = vmatpush3.bf16.msra.mxu0 %v3384_v50  ;;  %v2549_v22 = vpack.c.bf16 %v382_v11, %v381_v10 }
 0x2a2   : > { %1987 = vst.msk [vmem:[%s3394_s27 + $0x10] sm:$0xff] %vm1096_vm2, %v1307_v51  ;;  %v1310_v55 = vmul.f32 %v3325_v6, %v1294_v45  ;;  %v1296_v57 = vmul.f32 %v2677_v33, %v1280_v46  ;;  %v1277_v58 = vsub.f32 2.0, %v1261_v48  ;;  %v1263_v61 = vmul.f32 %v2681_v52, %v1213_v9  ;;  %2428 = vmatprep.mubr.msk.f32.mxu1 %vm1096_vm2, %v1307_v51  ;;  %v1237_v59 = vpop.xlane.xlu1 %1236 }
 0x2a3   : > { %2538 = vmatprep.subr.bf16.mxu0 %v3409_v42  ;;  %v2683_v60 = vpop.eup %2682  ;;  %2692 = vrcp.f32 %v1237_v59  ;;  %2429 = vmatmul.mubr.msk.f32.vlgmr.msra.gmra.mrb[8].mxu1 %vm1096_vm2, %v1308_v28 }
 0x2a4   : > { %1990 = vst.msk [vmem:[%s3394_s27 + $0x28] sm:$0xff] %vm1096_vm2, %v1310_v55  ;;  %v1312_v50 = vmul.f32 %v3321_v2, %v1296_v57  ;;  %v1293_v6 = vmul.f32 %v2679_v44, %v1277_v58  ;;  %v1279_v62 = vsub.f32 2.0, %v1263_v61  ;;  %v1266_v63 = vmul.f32 %v2683_v60, %v1222_v14  ;;  %v1234_v0 = vpop.xlane.xlu0 %1233  ;;  %2536 = vmatpush3.bf16.msra.mxu1 %v3389_v54 }
 0x2a5   : > { %v2685_v4 = vpop.eup %2684  ;;  %2694 = vrcp.f32 %v1234_v0  ;;  %2542 = vmatprep.subr.bf16.mxu1 %v2541_v53  ;;  %v2545_v54 = vpack.c.bf16 %v380_v3, %v379_v1 }
 0x2a6   : > { %1992 = vst.msk [vmem:[%s3394_s27 + $0x38] sm:$0xff] %vm1096_vm2, %v1312_v50  ;;  %v1309_v5 = vmul.f32 %v3335_v15, %v1293_v6  ;;  %v1295_v7 = vmul.f32 %v2681_v52, %v1279_v62  ;;  %v1282_v2 = vsub.f32 2.0, %v1266_v63  ;;  %v1268_v8 = vmul.f32 %v2685_v4, %v1228_v23  ;;  %v1240_v9 = vpop.xlane.xlu1 %1239 }
 0x2a7   : > { %v2687_v13 = vpop.eup %2686  ;;  %2696 = vrcp.f32 %v1240_v9 }
 0x2a8   : > { %1989 = vst.msk [vmem:[%s3394_s27 + $0x20] sm:$0xff] %vm1096_vm2, %v1309_v5  ;;  %v1311_v14 = vmul.f32 %v3331_v12, %v1295_v7  ;;  %v1298_v16 = vmul.f32 %v2683_v60, %v1282_v2  ;;  %v1284_v21 = vsub.f32 2.0, %v1268_v8  ;;  %v1265_v19 = vmul.f32 %v2687_v13, %v3401_v31  ;;  %2435 = vmatprep.mubr.msk.f32.mxu0 %vm1096_vm2, %v1309_v5 }
 0x2a9   : > { %v2689_v15 = vpop.eup %2688  ;;  %2436 = vmatmul.mubr.msk.f32.vlgmr.msra.gmra.mrb[10].mxu0 %vm1096_vm2, %v1310_v55 }
 0x2aa   : > { %1991 = vst.msk [vmem:[%s3394_s27 + $0x30] sm:$0xff] %vm1096_vm2, %v1311_v14  ;;  %v1314_v23 = vmul.f32 %v3345_v27, %v1298_v16  ;;  %v1300_v20 = vmul.f32 %v2685_v4, %v1284_v21  ;;  %v1281_v25 = vsub.f32 2.0, %v1265_v19  ;;  %v1267_v12 = vmul.f32 %v2689_v15, %v3407_v41  ;;  %2442 = vmatprep.mubr.msk.f32.mxu1 %vm1096_vm2, %v1311_v14 }
 0x2ab   : > { %2540 = vmatpush3.bf16.msra.mxu0 %v3409_v42  ;;  %v2691_v26 = vpop.eup %2690  ;;  %2443 = vmatmul.mubr.msk.f32.vlgmr.msra.gmra.mrb[10].mxu1 %vm1096_vm2, %v1312_v50 }
 0x2ac   : > { %2546 = vmatprep.subr.bf16.mxu0 %v2545_v54  ;;  %1994 = vst.msk [vmem:[%s3394_s27 + $0x48] sm:$0xff] %vm1096_vm2, %v1314_v23  ;;  %v1316_v47 = vmul.f32 %v3341_v24, %v1300_v20  ;;  %v1297_v28 = vmul.f32 %v2687_v13, %v1281_v25  ;;  %v1283_v27 = vsub.f32 2.0, %v1267_v12  ;;  %v1269_v17 = vmul.f32 %v2691_v26, %v1231_v49 }
 0x2ad   : > { %2544 = vmatpush3.bf16.msra.mxu1 %v2541_v53  ;;  %v2693_v18 = vpop.eup %2692 }
 0x2ae   : > { %2550 = vmatprep.subr.bf16.mxu1 %v2549_v22  ;;  %1996 = vst.msk [vmem:[%s3394_s27 + $0x58] sm:$0xff] %vm1096_vm2, %v1316_v47  ;;  %v1313_v31 = vmul.f32 %v3353_v30, %v1297_v28  ;;  %v1299_v33 = vmul.f32 %v2689_v15, %v1283_v27  ;;  %v1285_v35 = vsub.f32 2.0, %v1269_v17  ;;  %v1271_v37 = vmul.f32 %v2693_v18, %v1237_v59 }
 0x2af   : > { %v2695_v39 = vpop.eup %2694 }
 0x2b0   : > { %1993 = vst.msk [vmem:[%s3394_s27 + $0x40] sm:$0xff] %vm1096_vm2, %v1313_v31  ;;  %v1315_v24 = vmul.f32 %v3349_v29, %v1299_v33  ;;  %v1301_v40 = vmul.f32 %v2691_v26, %v1285_v35  ;;  %v1287_v41 = vsub.f32 2.0, %v1271_v37  ;;  %v1270_v42 = vmul.f32 %v2695_v39, %v1234_v0  ;;  %2449 = vmatprep.mubr.msk.f32.mxu0 %vm1096_vm2, %v1313_v31 }
 0x2b1   : > { %v2697_v56 = vpop.eup %2696  ;;  %2450 = vmatmul.mubr.msk.f32.vlgmr.msra.gmra.mrb[12].mxu0 %vm1096_vm2, %v1314_v23 }
 0x2b2   : > { %1995 = vst.msk [vmem:[%s3394_s27 + $0x50] sm:$0xff] %vm1096_vm2, %v1315_v24  ;;  %v1317_v30 = vmul.f32 %v3357_v32, %v1301_v40  ;;  %v1303_v43 = vmul.f32 %v2693_v18, %v1287_v41  ;;  %v1286_v44 = vsub.f32 2.0, %v1270_v42  ;;  %v1272_v51 = vmul.f32 %v2697_v56, %v1240_v9  ;;  %2456 = vmatprep.mubr.msk.f32.mxu1 %vm1096_vm2, %v1315_v24 }
 0x2b3   : > { %2548 = vmatpush3.bf16.msra.mxu0 %v2545_v54  ;;  %2457 = vmatmul.mubr.msk.f32.vlgmr.msra.gmra.mrb[12].mxu1 %vm1096_vm2, %v1316_v47 }
 0x2b4   : > { %1997 = vst.msk [vmem:[%s3394_s27 + $0x60] sm:$0xff] %vm1096_vm2, %v1317_v30  ;;  %v1319_v29 = vmul.f32 %v3361_v34, %v1303_v43  ;;  %v1302_v45 = vmul.f32 %v2695_v39, %v1286_v44  ;;  %v1288_v46 = vsub.f32 2.0, %v1272_v51  ;;  %2463 = vmatprep.mubr.msk.f32.mxu0 %vm1096_vm2, %v1317_v30  ;;  %2552 = vmatpush3.bf16.msra.mxu1 %v2549_v22 }
 0x2b6   : > { %1999 = vst.msk [vmem:[%s3394_s27 + $0x70] sm:$0xff] %vm1096_vm2, %v1319_v29  ;;  %v1318_v32 = vmul.f32 %v3365_v36, %v1302_v45  ;;  %v1304_v48 = vmul.f32 %v2697_v56, %v1288_v46  ;;  %2470 = vmatprep.mubr.msk.f32.mxu1 %vm1096_vm2, %v1319_v29 }
 0x2b8   : > { %1998 = vst.msk [vmem:[%s3394_s27 + $0x68] sm:$0xff] %vm1096_vm2, %v1318_v32  ;;  %v1320_v49 = vmul.f32 %v3369_v38, %v1304_v48  ;;  %2464 = vmatmul.mubr.msk.f32.vlgmr.msra.gmra.mrb[14].mxu0 %vm1096_vm2, %v1318_v32 }
 0x2ba   : > { %2000 = vst.msk [vmem:[%s3394_s27 + $0x78] sm:$0xff] %vm1096_vm2, %v1320_v49  ;;  %2471 = vmatmul.mubr.msk.f32.vlgmr.msra.gmra.mrb[14].mxu1 %vm1096_vm2, %v1320_v49 }
 0x2bb   : > { %2801 = shalt.err (!%p2798_p13)
}
 0x2bc   : > { %s2802_s6 = scalar_lea.hbm %s3487_s5, 2048  ;;  %s2806_s26 = scalar_lea.hbm %s3618_s4, 4096 }
 0x2bd   : > { %p2803_p11 = scmp.ne.s32.totalorder %s3487_s5, %s2802_s6  ;;  %p2807_p7 = scmp.lt.u32.totalorder %s3487_s5, %s3618_s4 }
 0x2be   : > { %p2808_p4 = scmp.lt.u32.totalorder %s2806_s26, %s2802_s6  ;;  %p2810_p0 = scmp.lt.u32.totalorder %s2802_s6, %s3487_s5 }
 0x2bf   : > { %p2804_p2 = pnand %p2803_p11, %p3652_p10 }
 0x2c0   : > { %p2809_p3 = por %p2808_p4, %p2807_p7 }
 0x2c1   : > { %p2805_p5 = pneg %p2804_p2 }
 0x2c2   : > { %p2811_p8 = por %p2810_p0, %p2809_p3 }
 0x2c4   : > { %p2812_p9 = pnand %p2811_p8, %p2805_p5 }
 0x2c6   : > { %2815 = shalt.err (!%p2812_p9)
}
 0x2c7   : > { %s2914_s13 = smov 128   ;;  %s2915_s21 = smov 8  }
 0x2c8   : > { %2560 = dma.vmem_to_hbm [thread:$0]  (%p3652_p10), %s3490_s7, 2048, %s3487_s5, %s2007_s11, %s2914_s13, %s2914_s13, %s2915_s21  }
 0x2c9   : > { %s3520_s27 = scalar_lea.vmem [#allocation8], %s3155_s14  ;;  %s3556_s5 = scalar_lea.hbm %s3617_s3, %s2294_s19 }
 0x2ca   : > { %s2023_s14 = sshll.u32 %s3520_s27, 4  ;;  %s2002_s7 = scalar_lea.sflag [#allocation4], %s3152_s25  ;;  %s3558_s14 = int_to_ptr.vmem [resolvable:$true] %s2023_s14 }
 0x2cb   : > { %s2816_s11 = scalar_lea.vmem %s3558_s14, 2048  ;;  %s2916_s18 = smov [#allocation8]  }
 0x2cc   : > { %p2817_p12 = scmp.ne.s32.totalorder %s3558_s14, %s2816_s11  ;;  %s2820_s12 = sshll.u32 %s2916_s18, 4  ;;  %s2821_s12 = int_to_ptr.vmem [resolvable:$false] %s2820_s12 }
 0x2cd   : > { %s2822_s19 = scalar_lea.vmem %s2821_s12, 4096  ;;  %p2823_p13 = scmp.lt.s32.totalorder %s3558_s14, %s2821_s12 }
 0x2ce   : > { %p2818_p1 = pnand %p2817_p12, %p3652_p10  ;;  %p2824_p11 = scmp.lt.s32.totalorder %s2822_s19, %s2816_s11 }
 0x2d0   : > { %p2819_p6 = pneg %p2818_p1  ;;  %p2825_p2 = por %p2824_p11, %p2823_p13 }
 0x2d2   : > { %p2826_p5 = pnand %p2825_p2, %p2819_p6 }
 0x373   : > { %v2423_v34 = vpop.f32.mrb[8].mxu0 }
 0x374   : > { %1970 = vst.msk [vmem:[%s3520_s27 + $0x8] sm:$0xff] %vm399_vm0, %v2423_v34  ;;  %v1393_v36 = vpop.f32.mrb[9].mxu0 }
 0x375   : > { %1969 = vst.msk [vmem:[%s3520_s27] sm:$0xff] %vm399_vm0, %v1393_v36 }
 0x376   : > { %v2430_v38 = vpop.f32.mrb[8].mxu1 }
 0x377   : > { %1972 = vst.msk [vmem:[%s3520_s27 + $0x18] sm:$0xff] %vm399_vm0, %v2430_v38  ;;  %v1474_v52 = vpop.f32.mrb[9].mxu1 }
 0x378   : > { %1971 = vst.msk [vmem:[%s3520_s27 + $0x10] sm:$0xff] %vm399_vm0, %v1474_v52 }
 0x37c   : > { %v2437_v53 = vpop.f32.mrb[10].mxu0 }
 0x37d   : > { %1974 = vst.msk [vmem:[%s3520_s27 + $0x28] sm:$0xff] %vm399_vm0, %v2437_v53  ;;  %v1555_v55 = vpop.f32.mrb[11].mxu0 }
 0x37e   : > { %1973 = vst.msk [vmem:[%s3520_s27 + $0x20] sm:$0xff] %vm399_vm0, %v1555_v55  ;;  %v2444_v57 = vpop.f32.mrb[10].mxu1 }
 0x37f   : > { %1976 = vst.msk [vmem:[%s3520_s27 + $0x38] sm:$0xff] %vm399_vm0, %v2444_v57  ;;  %v1636_v58 = vpop.f32.mrb[11].mxu1 }
 0x380   : > { %1975 = vst.msk [vmem:[%s3520_s27 + $0x30] sm:$0xff] %vm399_vm0, %v1636_v58 }
 0x384   : > { %v2451_v61 = vpop.f32.mrb[12].mxu0 }
 0x385   : > { %1978 = vst.msk [vmem:[%s3520_s27 + $0x48] sm:$0xff] %vm399_vm0, %v2451_v61  ;;  %v1717_v59 = vpop.f32.mrb[13].mxu0 }
 0x386   : > { %1977 = vst.msk [vmem:[%s3520_s27 + $0x40] sm:$0xff] %vm399_vm0, %v1717_v59  ;;  %v2458_v60 = vpop.f32.mrb[12].mxu1 }
 0x387   : > { %1980 = vst.msk [vmem:[%s3520_s27 + $0x58] sm:$0xff] %vm399_vm0, %v2458_v60  ;;  %v1798_v50 = vpop.f32.mrb[13].mxu1 }
 0x388   : > { %1979 = vst.msk [vmem:[%s3520_s27 + $0x50] sm:$0xff] %vm399_vm0, %v1798_v50 }
 0x38b   : > { %v2465_v6 = vpop.f32.mrb[14].mxu0 }
 0x38c   : > { %1982 = vst.msk [vmem:[%s3520_s27 + $0x68] sm:$0xff] %vm399_vm0, %v2465_v6  ;;  %v1879_v62 = vpop.f32.mrb[15].mxu0 }
 0x38d   : > { %1981 = vst.msk [vmem:[%s3520_s27 + $0x60] sm:$0xff] %vm399_vm0, %v1879_v62  ;;  %v2472_v63 = vpop.f32.mrb[14].mxu1 }
 0x38e   : > { %1984 = vst.msk [vmem:[%s3520_s27 + $0x78] sm:$0xff] %vm399_vm0, %v2472_v63  ;;  %v1960_v0 = vpop.f32.mrb[15].mxu1 }
 0x38f   : > { %1983 = vst.msk [vmem:[%s3520_s27 + $0x70] sm:$0xff] %vm399_vm0, %v1960_v0 }
 0x390   : > { %2829 = shalt.err (!%p2826_p5)
}
 0x391   : > { %s2830_s20 = scalar_lea.hbm %s3556_s5, 2048  ;;  %s2834_s6 = scalar_lea.hbm %s3617_s3, 4096 }
 0x392   : > { %p2831_p7 = scmp.ne.s32.totalorder %s3556_s5, %s2830_s20  ;;  %p2835_p0 = scmp.lt.u32.totalorder %s3556_s5, %s3617_s3 }
 0x393   : > { %p2836_p8 = scmp.lt.u32.totalorder %s2834_s6, %s2830_s20  ;;  %p2838_p12 = scmp.lt.u32.totalorder %s2830_s20, %s3556_s5 }
 0x394   : > { %p2832_p4 = pnand %p2831_p7, %p3652_p10 }
 0x395   : > { %p2837_p9 = por %p2836_p8, %p2835_p0 }
 0x396   : > { %p2833_p3 = pneg %p2832_p4 }
 0x397   : > { %p2839_p1 = por %p2838_p12, %p2837_p9 }
 0x399   : > { %p2840_p6 = pnand %p2839_p1, %p2833_p3 }
 0x39b   : > { %2843 = shalt.err (!%p2840_p6)
}
 0x39c   : > { %2559 = dma.vmem_to_hbm [thread:$0]  (%p3652_p10), %s3558_s14, 2048, %s3556_s5, %s2002_s7, %s2914_s13, %s2914_s13, %s2915_s21  }
 0x39d PF: > { %s3653_s26 = sld [smem:[#allocation16_spill]]  ;;  %s2057_s22 = sand.u32 1, %s2886_s15  }
 0x39e   : > { %p3654_p13 = scmp.ne.s32.totalorder %s3638_s30, 0  ;;  %s2058_s24 = scalar_lea.sflag [#allocation4], %s2057_s22 }
 0x3a3   : > { %p3655_p11 = scmp.ge.s32.totalorder %s3653_s26, 2 }
 0x3a5   : > { %p2574_p2 = pnand %p3655_p11, %p3654_p13 }
 0x3a7   : > { %2877 = dma.done.wait (!%p2574_p2), %s2058_s24, 2048  }
 0x3a8   : > { %2879 = vsyncadd (!%p2574_p2), %s2058_s24, 4294965248  ;;  %s2067_s28 = scalar_lea.sflag [#allocation10], %s2057_s22 }
 0x3a9   : > { %2881 = dma.done.wait (!%p2574_p2), %s2067_s28, 2048  }
 0x3aa   : > { %2883 = vsyncadd (!%p2574_p2), %s2067_s28, 4294965248  ;;  %s27_s20 = sadd.s32 1, %s3653_s26   ;;  %s3656_s25 = sld [smem:[#allocation18_spill]] }
 0x3ab   : > { %p24_p5 = scmp.ge.s32.totalorder %s27_s20, 4   ;;  %s3657_s18 = sld [smem:[#allocation15_spill]] }
 0x3ac   : > { %s3658_s19 = sld [smem:[#allocation17_spill]]  ;;  %s3659_s15 = smov %s2890_s16 }
 0x3ad   : > { %s3660_s16 = smov %s2894_s17  ;;  %26 = sbr.rel (!%p24_p5) target bundleno = 12 (0xc), region = 118 }
 0x3b0   : > { %s3661_s17 = smov %s3656_s25 }
 0x3b4   :  { %2072 = vsyncpa [#allocation3], 1 }
 0x3b5   :  { %2074 = vsyncpa [#allocation3 + $0x1], 1 }
 0x3b6   :  { %2075 = vsyncpa [#allocation6], 1 }
 0x3b7   :  { %2077 = vsyncpa [#allocation6 + $0x1], 1 }
 0x3b8   :  { %2078 = vsyncpa [#allocation4], 1 }
 0x3b9   :  { %2080 = vsyncpa [#allocation4 + $0x1], 1 }
 0x3ba   :  { %2081 = vsyncpa [#allocation10], 1 }
 0x3bb   :  { %2083 = vsyncpa [#allocation10 + $0x1], 1 }

</bundles_post_ra>
